<compile_context>
chip_gen: v5e
topology: v5e:2x2
jax: 0.10.0
libtpu: 0.0.40
codegen_flags: <defaults>
</compile_context>

<pallas_src>
import functools

import jax
import jax.numpy as jnp
from jax.experimental import pallas as pl
from jax.experimental.pallas import tpu as pltpu


def _batch_entropy_kernel(prob_ref, be_ref, *, batch, relayout):
    """prob_ref: (B, ts, C) block; be_ref: (1, ts) block (f32)."""
    ts = prob_ref.shape[1]
    C = prob_ref.shape[2]

    # relayout=True  -> work in (C, ts): sources on lanes (dense for small C).
    # relayout=False -> work in (ts, C): classes on lanes (dense for C >= 128).
    acc_shape = (C, ts) if relayout else (ts, C)
    red_axis = 0 if relayout else 1

    def body(b, acc):
        x = prob_ref[b].astype(jnp.float32)                 # (ts, C)
        if relayout:
            x = x.T                                          # (C, ts), XLU slot
        # Numerically stable softmax over the class axis.
        m = jnp.max(x, axis=red_axis, keepdims=True)
        e = jnp.exp(x - m)
        s = jnp.sum(e, axis=red_axis, keepdims=True)
        # reciprocal-multiply instead of a broadcast divide over the full tile.
        return acc + e * pl.reciprocal(s, approx=False)

    acc = jax.lax.fori_loop(0, batch, body,
                            jnp.zeros(acc_shape, jnp.float32),
                            unroll=batch <= 8)

    pm = acc * jnp.float32(1.0 / batch)                      # batch mean
    # Fused negations: be = -sum(pm * -log(pm)) = sum(pm * log(pm)).
    be = jnp.sum(pm * jnp.log(pm), axis=red_axis)            # (ts,)
    be_ref[...] = be[None, :]


def _vmem_budget_and_limit():
    """Per-generation VMEM numbers: scoped limit to request and the working-set
    budget used for tile sizing (v5e/v6e: 128 MiB physical, v7x: 64 MiB)."""
    phys = 64 << 20                      # conservative default = v7x per-core VMEM
    try:
        info = pltpu.get_tpu_info()
        phys = int(getattr(info, "vmem_capacity_bytes", phys)) or phys
    except Exception:
        pass
    limit = min((phys * 3) // 4, 96 << 20)   # v5e/v6e -> 96 MiB, v7x -> 48 MiB
    budget = (limit * 2) // 3                # headroom for Mosaic internals
    return budget, limit


def _choose_tile_s(B, S, C, in_itemsize, budget_bytes):
    """Pick the S-tile: a multiple of 128 (lane-dense (1, ts) output blocks) or
    the full S dim.  Sized from the real VMEM working set and capped so the
    grid keeps >=4 (else >=2) steps for v7x megacore + DMA/compute pipelining."""
    # Per S-row of a block:
    #   2 * B * C * in_itemsize : double-buffered input DMA slabs (input dtype)
    #   ~6 * C * 4              : live f32 temporaries of the per-sample loop
    #                             (x, x^T, e, p, acc carry) + headroom
    bytes_per_row = 2 * B * C * in_itemsize + 6 * C * 4
    if S <= 128:
        return S                                    # single full-S block (always legal)
    ts = max(budget_bytes // max(bytes_per_row, 1), 1)
    ts = min(ts, S)
    ts = max((ts // 128) * 128, 128)                # 128-aligned lane-dense tiles
    cap4 = (pl.cdiv(S, 4) // 128) * 128             # >=4 grid steps if possible
    cap2 = (pl.cdiv(S, 2) // 128) * 128             # else >=2
    if cap4 >= 128:
        ts = min(ts, cap4)
    elif cap2 >= 128:
        ts = min(ts, cap2)
    return ts


def _use_relayout(C, ts):
    # Sources-on-lanes only pays off (and only lowers to clean 32-bit
    # transposes) when the tile is lane-dense and C is sublane-friendly.
    return (C % 8 == 0) and (C < 128) and (ts % 128 == 0)


@functools.partial(jax.jit, static_argnums=(1, 2))
def _batch_entropy_pallas(prob, ts, vmem_limit_bytes):
    B, S, C = prob.shape
    kernel = functools.partial(_batch_entropy_kernel,
                               batch=B, relayout=_use_relayout(C, ts))
    be2d = pl.pallas_call(
        kernel,
        out_shape=jax.ShapeDtypeStruct((1, S), jnp.float32),
        grid=(pl.cdiv(S, ts),),
        in_specs=[pl.BlockSpec((B, ts, C), lambda i: (0, i, 0))],
        out_specs=pl.BlockSpec((1, ts), lambda i: (0, i)),
        compiler_params=pltpu.CompilerParams(
            # Each S-tile is independent -> megacore-shardable on v7x.
            dimension_semantics=("parallel",),
            vmem_limit_bytes=vmem_limit_bytes,
        ),
    )(prob)
    be = be2d[0]
    # Scalar mean hoisted out of the kernel (keeps the grid axis parallel).
    return jnp.mean(be), be


def batch_entropy_loss(prob):
    """prob: (B, S, C) logits (f32 or bf16). Returns (loss, batch_entropy (S,))."""
    B, S, C = prob.shape
    budget, limit = _vmem_budget_and_limit()
    ts = _choose_tile_s(B, S, C, jnp.dtype(prob.dtype).itemsize, budget)
    return _batch_entropy_pallas(prob, ts, limit)


def _reference(prob):
    p = jax.nn.softmax(prob.astype(jnp.float32), axis=2)
    pm = p.mean(axis=0)
    be = -(pm * -jnp.log(pm)).sum(axis=1)
    return be.mean(), be


if __name__ == "__main__":
    key = jax.random.PRNGKey(0)
    k1, k2, k3 = jax.random.split(key, 3)

    # 1) Small shape implied by the module: (batch=2, n_sources=4, n_classes=16).
    prob = jax.random.normal(k1, (2, 4, 16), dtype=jnp.float32)
    loss, be = batch_entropy_loss(prob)
    jax.block_until_ready((loss, be))
    rl, rb = _reference(prob)
    assert jnp.allclose(loss, rl, atol=1e-4), (loss, rl)
    assert jnp.allclose(be, rb, atol=1e-4)

    # 2) bf16 input + few classes: exercises the sources-on-lanes (transpose)
    #    path and the 128-aligned multi-tile grid (S=512 -> 4 tiles of 128).
    prob = jax.random.normal(k2, (2, 512, 16), dtype=jnp.float32).astype(jnp.bfloat16)
    loss, be = batch_entropy_loss(prob)
    jax.block_until_ready((loss, be))
    rl, rb = _reference(prob)
    assert jnp.allclose(loss, rl, atol=1e-4), (loss, rl)
    assert jnp.allclose(be, rb, atol=1e-4)

    # 3) f32, wide classes: direct classes-on-lanes path with 128-row tiles.
    prob = jax.random.normal(k3, (4, 256, 128), dtype=jnp.float32)
    loss, be = batch_entropy_loss(prob)
    jax.block_until_ready((loss, be))
    rl, rb = _reference(prob)
    assert jnp.allclose(loss, rl, atol=1e-4), (loss, rl)
    assert jnp.allclose(be, rb, atol=1e-4)

    print("KERNEL_OK")
</pallas_src>

<mosaic_0001>
module attributes {stable_mosaic.version = 11 : i64} {
  func.func @_batch_entropy_kernel(%arg0: i32, %arg1: memref<2x4x16xf32, #tpu.memory_space<vmem>>, %arg2: memref<1x4xf32, #tpu.memory_space<vmem>>) attributes {dimension_semantics = [#tpu.dimension_semantics<parallel>], iteration_bounds = array<i64: 1>, scalar_prefetch = 0 : i64, scratch_operands = 0 : i64, tpu.core_type = #tpu.core_type<tc>, window_params = [{transform_indices = @transform_0, window_bounds = array<i64: 2, 4, 16>}, {transform_indices = @transform_1, window_bounds = array<i64: 1, 4>}]} {
    %cst = arith.constant 0.000000e+00 : f32
    %0 = vector.broadcast %cst : f32 to vector<4x16xf32>
    %c0_i32 = arith.constant 0 : i32
    %1 = arith.index_cast %c0_i32 : i32 to index
    %c0 = arith.constant 0 : index
    %c0_0 = arith.constant 0 : index
    %2 = vector.load %arg1[%1, %c0, %c0_0] : memref<2x4x16xf32, #tpu.memory_space<vmem>>, vector<1x4x16xf32>
    %3 = vector.shape_cast %2 : vector<1x4x16xf32> to vector<4x16xf32>
    %cst_1 = arith.constant dense<0xFF800000> : vector<4xf32>
    %4 = vector.multi_reduction <maximumf>, %3, %cst_1 [1] : vector<4x16xf32> to vector<4xf32>
    %5 = vector.shape_cast %4 : vector<4xf32> to vector<4x1xf32>
    %6 = vector.broadcast %5 : vector<4x1xf32> to vector<4x16xf32>
    %7 = arith.subf %3, %6 : vector<4x16xf32>
    %8 = math.exp %7 : vector<4x16xf32>
    %cst_2 = arith.constant dense<0.000000e+00> : vector<4xf32>
    %9 = vector.multi_reduction <add>, %8, %cst_2 [1] : vector<4x16xf32> to vector<4xf32>
    %10 = vector.shape_cast %9 : vector<4xf32> to vector<4x1xf32>
    %11 = tpu.reciprocal %10 : vector<4x1xf32> -> vector<4x1xf32>
    %12 = vector.broadcast %11 : vector<4x1xf32> to vector<4x16xf32>
    %13 = arith.mulf %8, %12 : vector<4x16xf32>
    %14 = arith.addf %0, %13 : vector<4x16xf32>
    %c1_i32 = arith.constant 1 : i32
    %15 = arith.index_cast %c1_i32 : i32 to index
    %c0_3 = arith.constant 0 : index
    %c0_4 = arith.constant 0 : index
    %16 = vector.load %arg1[%15, %c0_3, %c0_4] : memref<2x4x16xf32, #tpu.memory_space<vmem>>, vector<1x4x16xf32>
    %17 = vector.shape_cast %16 : vector<1x4x16xf32> to vector<4x16xf32>
    %cst_5 = arith.constant dense<0xFF800000> : vector<4xf32>
    %18 = vector.multi_reduction <maximumf>, %17, %cst_5 [1] : vector<4x16xf32> to vector<4xf32>
    %19 = vector.shape_cast %18 : vector<4xf32> to vector<4x1xf32>
    %20 = vector.broadcast %19 : vector<4x1xf32> to vector<4x16xf32>
    %21 = arith.subf %17, %20 : vector<4x16xf32>
    %22 = math.exp %21 : vector<4x16xf32>
    %cst_6 = arith.constant dense<0.000000e+00> : vector<4xf32>
    %23 = vector.multi_reduction <add>, %22, %cst_6 [1] : vector<4x16xf32> to vector<4xf32>
    %24 = vector.shape_cast %23 : vector<4xf32> to vector<4x1xf32>
    %25 = tpu.reciprocal %24 : vector<4x1xf32> -> vector<4x1xf32>
    %26 = vector.broadcast %25 : vector<4x1xf32> to vector<4x16xf32>
    %27 = arith.mulf %22, %26 : vector<4x16xf32>
    %28 = arith.addf %14, %27 : vector<4x16xf32>
    %c2_i32 = arith.constant 2 : i32
    %cst_7 = arith.constant 5.000000e-01 : f32
    %29 = vector.broadcast %cst_7 : f32 to vector<4x16xf32>
    %30 = arith.mulf %28, %29 : vector<4x16xf32>
    %31 = math.log %30 : vector<4x16xf32>
    %32 = arith.mulf %30, %31 : vector<4x16xf32>
    %cst_8 = arith.constant dense<0.000000e+00> : vector<4xf32>
    %33 = vector.multi_reduction <add>, %32, %cst_8 [1] : vector<4x16xf32> to vector<4xf32>
    %34 = vector.shape_cast %33 : vector<4xf32> to vector<1x4xf32>
    %c0_9 = arith.constant 0 : index
    %c0_10 = arith.constant 0 : index
    %35 = vector.load %arg2[%c0_9, %c0_10] : memref<1x4xf32, #tpu.memory_space<vmem>>, vector<1x4xf32>
    tpu.vector_store %arg2[%c0_9, %c0_10], %34 {strides = array<i32>} : memref<1x4xf32, #tpu.memory_space<vmem>>, vector<1x4xf32>,
    return
  }
  func.func @transform_0(%arg0: i32) -> (i32, i32, i32) {
    %c0_i32 = arith.constant 0 : i32
    %c0_i32_0 = arith.constant 0 : i32
    %c0_i32_1 = arith.constant 0 : i32
    return %c0_i32, %arg0, %c0_i32_0 : i32, i32, i32
  }
  func.func @transform_1(%arg0: i32) -> (i32, i32) {
    %c0_i32 = arith.constant 0 : i32
    %c0_i32_0 = arith.constant 0 : i32
    return %c0_i32, %arg0 : i32, i32
  }
}

</mosaic_0001>

<bundles_post_ra>
// kernel: _batch_entropy_pallas.1
= control target key start
LH: loop header
LB: loop body
LE: loop exit
PB: predicated region body
PF: predicated region fallthrough
CT: control target
= control target key end

     0   :  { %6 = vsyncpa [#allocation3], 0  ;;  %s136_s9 = smov [#allocation2]   ;;  %s137_s11 = smov 64   ;;  %s160_s0 = inlined_call_operand.hbm [shape: f32[2,4,16], index: 0, kind: input, shape index: {}]   ;;  %s161_s1 = inlined_call_operand.vmem [shape: f32[1,4], index: 1, kind: output, shape index: {}]  }
   0x1   :  { %s11_s8 = sshll.u32 %s160_s0, 4  ;;  %s13_s10 = sshll.u32 %s136_s9, 4  ;;  %s12_s8 = int_to_ptr.hbm [resolvable:$true] %s11_s8  ;;  %s14_s10 = int_to_ptr.vmem [resolvable:$true] %s13_s10 }
   0x2   :  { %s138_s12 = smov 4  }
   0x3   :  { %19 = dma.hbm_to_vmem [thread:$0]  %s12_s8, 128, %s14_s10, [#allocation3], %s137_s11, %s137_s11, %s138_s12  }
   0x4   :  { %134 = dma.done.wait [#allocation3], 128  }
   0x5   :  { %135 = vsyncadd [#allocation3], 4294967168  ;;  %vm25_vm0 = vcmask 125952   ;;  %v24_v0 = vld [vmem:[#allocation2] sm:$0xf]  ;;  %v86_v44 = vlaneseq  ;;  %vm90_vm9 = vcmask 24576  }
   0x6   :  { %v26_v1 = vsel %vm25_vm0, %v24_v0, -inf  ;;  %v52_v2 = vld [vmem:[#allocation2 + $0x4] sm:$0xf] }
   0x7   :  { %27 = vmax.xlane.f32.xlu0 %v26_v1  ;;  %v53_v3 = vsel %vm25_vm0, %v52_v2, -inf  ;;  %v87_v45 = vand.u32 127, %v86_v44 }
   0xf   :  { %54 = vmax.xlane.f32.xlu0 %v53_v3 }
  0x7a   :  { %v28_v4 = vpop.xlane.xlu0 %27 }
  0x7b   :  { %v29_v5 = vsub.f32 %v24_v0, %v28_v4 }
  0x7d   :  { %v30_v6 = vmul.f32 1.442695, %v29_v5 }
  0x7f   :  { %100 = vpow2.f32 %v30_v6 }
  0x82   :  { %v55_v7 = vpop.xlane.xlu0 %54 }
  0x83   :  { %v56_v8 = vsub.f32 %v52_v2, %v55_v7 }
  0x85   :  { %v101_v9 = vpop.eup %100  ;;  %v57_v10 = vmul.f32 1.442695, %v56_v8 }
  0x86   :  { %v32_v11 = vsel %vm25_vm0, %v101_v9, 0.0 }
  0x87   :  { %102 = vpow2.f32 %v57_v10  ;;  %33 = vadd.xlane.f32.xlu1 %v32_v11 }
  0x8d   :  { %v103_v12 = vpop.eup %102 }
  0x8e   :  { %v59_v13 = vsel %vm25_vm0, %v103_v12, 0.0 }
  0x8f   :  { %60 = vadd.xlane.f32.xlu1 %v59_v13 }
  0xfa   :  { %v34_v14 = vpop.xlane.xlu1 %33 }
  0xfb   :  { %104 = vrcp.f32 %v34_v14  ;;  %v46_v23 = vand.u32 2147483648, %v34_v14  ;;  %vm40_vm2 = vweird.f32 %v34_v14  ;;  %v44_v24 = vand.u32 2147483647, %v34_v14 }
  0xfd   :  { %v47_v30 = vor.u32 1.1754944e-38, %v46_v23  ;;  %vm45_vm5 = vcmp.eq.f32.partialorder %v44_v24, 8.507059e+37 }
 0x101   :  { %v105_v15 = vpop.eup %104 }
 0x102   :  { %v36_v16 = vmul.f32 %v105_v15, %v34_v14  ;;  %v61_v17 = vpop.xlane.xlu1 %60  ;;  %vm41_vm1 = vweird.f32 %v105_v15 }
 0x103   :  { %106 = vrcp.f32 %v61_v17  ;;  %vm42_vm3 = vmor %vm40_vm2, %vm41_vm1  ;;  %v73_v26 = vand.u32 2147483648, %v61_v17  ;;  %v71_v28 = vand.u32 2147483647, %v61_v17  ;;  %vm67_vm6 = vweird.f32 %v61_v17 }
 0x104   :  { %v37_v18 = vsub.f32 1.0, %v36_v16 }
 0x105   :  { %v74_v32 = vor.u32 1.1754944e-38, %v73_v26  ;;  %vm72_vm8 = vcmp.eq.f32.partialorder %v71_v28, 8.507059e+37 }
 0x106   :  { %v38_v19 = vmul.f32 %v105_v15, %v37_v18 }
 0x108   :  { %v39_v21 = vadd.f32 %v105_v15, %v38_v19 }
 0x109   :  { %v107_v20 = vpop.eup %106 }
 0x10a   :  { %v63_v22 = vmul.f32 %v107_v20, %v61_v17  ;;  %vm68_vm4 = vweird.f32 %v107_v20  ;;  %v43_v29 = vsel %vm42_vm3, %v105_v15, %v39_v21 }
 0x10b   :  { %vm69_vm7 = vmor %vm67_vm6, %vm68_vm4  ;;  %v48_v33 = vsel %vm45_vm5, %v47_v30, %v43_v29 }
 0x10c   :  { %v64_v25 = vsub.f32 1.0, %v63_v22  ;;  %v49_v36 = vmul.f32 %v101_v9, %v48_v33 }
 0x10e   :  { %v65_v27 = vmul.f32 %v107_v20, %v64_v25 }
 0x110   :  { %v66_v31 = vadd.f32 %v107_v20, %v65_v27 }
 0x112   :  { %v70_v34 = vsel %vm69_vm7, %v107_v20, %v66_v31 }
 0x113   :  { %v75_v35 = vsel %vm72_vm8, %v74_v32, %v70_v34 }
 0x114   :  { %v76_v37 = vmul.f32 %v103_v12, %v75_v35 }
 0x116   :  { %v77_v38 = vadd.f32 %v76_v37, %v49_v36 }
 0x118   :  { %v78_v39 = vmul.f32 0.5, %v77_v38 }
 0x11a   :  { %108 = vlog2.f32 %v78_v39 }
 0x120   :  { %v109_v40 = vpop.eup %108 }
 0x121   :  { %v80_v41 = vmul.f32 0.6931472, %v109_v40 }
 0x123   :  { %v81_v42 = vmul.f32 %v80_v41, %v78_v39 }
 0x125   :  { %v82_v43 = vsel %vm25_vm0, %v81_v42, 0.0 }
 0x126   :  { %83 = vadd.xlane.f32.xlu2 %v82_v43 }
 0x199   :  { %v84_v46 = vpop.xlane.xlu2 %83 }
 0x19a   :  { %v88_v47 = vperm.slane %v84_v46, %v87_v45 }
 0x19c   :  { %91 = vst.msk [vmem:[%s161_s1] sm:$0x1] %vm90_vm9, %v88_v47 }
 0x19d   :  { %96 = vsyncpa [#allocation3], 1 }

</bundles_post_ra>
